<compile_context>
chip_gen: v6e
topology: v6e:2x2x1
jax: 0.10.0
libtpu: 0.0.40
codegen_flags: <defaults>
</compile_context>

<pallas_src>
import jax
import jax.numpy as jnp
from jax.experimental import pallas as pl
from jax.experimental.pallas import tpu as pltpu


def _make_outconv_kernel(nb):
    """Kernel factory; nb (batch block) is a small static int."""

    def kernel(x_ref, w_ref, b_ref, o_ref):
        # x_ref: (nb, C_in, T_HW)   w_ref: (C_out, C_in)   b_ref: (C_out, 1)
        # o_ref: (nb, C_out, T_HW)  -- HW on the lane axis => lane-dense stores.
        w = w_ref[...]
        b = b_ref[...].astype(jnp.float32)
        # After the tile-size fix this op is DMA-bound; MXU orientation (W as
        # LHS) is fine here.  If profiling ever shows per-tile weight-push
        # stalls for tiny C_out, switch to VPU multiply-accumulate sweeps.
        for i in range(nb):                       # static unroll (nb <= 8)
            acc = jnp.dot(w, x_ref[i], preferred_element_type=jnp.float32)
            o_ref[i] = (acc + b).astype(o_ref.dtype)

    return kernel


def _vmem_caps():
    """Generation-aware VMEM caps: (tile plan budget, vmem_limit_bytes cap)."""
    cap = 64 * 1024 * 1024                        # conservative default (v7x)
    try:
        cap = int(pltpu.get_tpu_info().vmem_capacity_bytes)
    except Exception:
        pass
    tile_budget = int(cap * 0.70)                 # ~44 MiB v7x, ~90 MiB v5e/v6e
    limit_cap = int(cap * 0.875)                  # ~56 MiB v7x, ~112 MiB v5e/v6e
    return tile_budget, limit_cap


def _plan_tiles(N, HW, c_in, c_out, itemsize, tile_budget,
                target_step_bytes=2 * 1024 * 1024):
    """Pick (nb, t_hw, hw_pad).

    t_hw: smallest lane-dense HW tile whose per-step activation DMA hits the
    byte target (else the largest that fits the double-buffered VMEM budget).
    nb: batch block, only used when a full-HW tile is still below the target.
    """
    bytes_per = max(int(itemsize), 4)             # conservative (f32 scratch)

    def fits(nb, t):
        return 2 * nb * t * (c_in + c_out) * bytes_per <= tile_budget

    def step_bytes(nb, t):
        return nb * t * c_in * int(itemsize)

    if HW % 128 == 0 or fits(1, HW):
        hw_pad = HW                               # full-extent block is legal
    else:
        hw_pad = pl.cdiv(HW, 128) * 128           # rare pad path (odd HW)

    cands = {hw_pad}
    c = 128
    while c < hw_pad:
        if hw_pad % c == 0:
            cands.add(c)
        c *= 2
    cands = sorted(cands)

    feasible = [t for t in cands if fits(1, t)] or [cands[0]]
    reach = [t for t in feasible if step_bytes(1, t) >= target_step_bytes]
    t_hw = min(reach) if reach else max(feasible)

    nb = 1
    if t_hw == hw_pad and step_bytes(1, t_hw) < target_step_bytes and N > 1:
        want = max(1, target_step_bytes // max(1, step_bytes(1, t_hw)))
        cap_nb = min(max(1, N // 2), 8)           # keep >=2 steps; bound unroll
        for d in range(1, N + 1):
            if N % d == 0 and d <= want and d <= cap_nb and fits(d, t_hw):
                nb = d
    return nb, t_hw, hw_pad


@jax.jit
def outconv_forward(x_nchw, weight, bias):
    """1x1 Conv2d forward, identical to nn.Conv2d(in_ch, out_ch, kernel_size=1).

    x_nchw : (N, C_in, H, W)
    weight : (C_out, C_in, 1, 1)   (PyTorch layout)
    bias   : (C_out,)
    returns: (N, C_out, H, W)
    """
    N, C_in, H, W = x_nchw.shape
    C_out = weight.shape[0]
    HW = H * W

    # Free, contiguous reshapes — no HBM transpose round trip.
    x3 = x_nchw.reshape(N, C_in, HW)              # (N, C_in, HW)
    w_mat = weight.reshape(C_out, C_in)           # (C_out, C_in)
    b_col = bias.reshape(C_out, 1)                # broadcasts over HW lanes

    itemsize = jnp.dtype(x_nchw.dtype).itemsize
    tile_budget, limit_cap = _vmem_caps()
    nb, t_hw, HW_pad = _plan_tiles(N, HW, C_in, C_out, itemsize, tile_budget)

    if HW_pad != HW:
        x3 = jnp.pad(x3, ((0, 0), (0, 0), (0, HW_pad - HW)))

    grid = (N // nb, HW_pad // t_hw)

    bytes_per = max(int(itemsize), 4)
    tile_bytes = 2 * nb * t_hw * (C_in + C_out) * bytes_per
    const_bytes = 2 * (C_in * C_out + C_out) * 4
    vmem_limit = int(min(limit_cap,
                         max(16 * 1024 * 1024, 2 * tile_bytes + const_bytes)))

    y3 = pl.pallas_call(
        _make_outconv_kernel(nb),
        out_shape=jax.ShapeDtypeStruct((N, C_out, HW_pad), x_nchw.dtype),
        grid_spec=pltpu.PrefetchScalarGridSpec(
            num_scalar_prefetch=0,
            grid=grid,
            in_specs=[
                # X tile: nb batches, full C_in, lane-dense HW tile.
                pl.BlockSpec((nb, C_in, t_hw), lambda n, j: (n, 0, j)),
                # Full weight matrix (constant index_map -> fetched once).
                pl.BlockSpec((C_out, C_in), lambda n, j: (0, 0)),
                # Bias column (constant index_map -> fetched once).
                pl.BlockSpec((C_out, 1), lambda n, j: (0, 0)),
            ],
            out_specs=pl.BlockSpec((nb, C_out, t_hw), lambda n, j: (n, 0, j)),
        ),
        compiler_params=pltpu.CompilerParams(
            dimension_semantics=("parallel", "parallel"),
            vmem_limit_bytes=vmem_limit,
        ),
    )(x3, w_mat, b_col)

    if HW_pad != HW:
        y3 = y3[..., :HW]
    return y3.reshape(N, C_out, H, W)


def _reference(x_nchw, weight, bias):
    # Pure-JAX reference: 1x1 conv == einsum over the channel dim.
    w_mat = weight.reshape(weight.shape[0], weight.shape[1])  # (C_out, C_in)
    return jnp.einsum("nchw,oc->nohw", x_nchw, w_mat) + bias[None, :, None, None]


if __name__ == "__main__":
    key = jax.random.PRNGKey(0)
    k_x, k_w, k_b = jax.random.split(key, 3)

    N, C_in, C_out, H, W = 2, 4, 3, 16, 16

    x = jax.random.normal(k_x, (N, C_in, H, W), dtype=jnp.float32)
    # Deterministic synthetic parameters (shapes from nn.Conv2d(in_ch, out_ch, 1))
    weight = jax.random.normal(k_w, (C_out, C_in, 1, 1), dtype=jnp.float32) * 0.1
    bias = jax.random.normal(k_b, (C_out,), dtype=jnp.float32) * 0.1

    y = outconv_forward(x, weight, bias)
    jax.block_until_ready(y)

    y_ref = _reference(x, weight, bias)
    assert y.shape == (N, C_out, H, W)
    assert jnp.allclose(y, y_ref, atol=1e-5, rtol=1e-5), "mismatch vs reference"

    print("KERNEL_OK")
</pallas_src>

<mosaic_0001>
module attributes {stable_mosaic.version = 11 : i64} {
  func.func @kernel(%arg0: i32, %arg1: i32, %arg2: memref<1x4x256xf32, #tpu.memory_space<vmem>>, %arg3: memref<3x4xf32, #tpu.memory_space<vmem>>, %arg4: memref<3x1xf32, #tpu.memory_space<vmem>>, %arg5: memref<1x3x256xf32, #tpu.memory_space<vmem>>) attributes {dimension_semantics = [#tpu.dimension_semantics<parallel>, #tpu.dimension_semantics<parallel>], iteration_bounds = array<i64: 2, 1>, scalar_prefetch = 0 : i64, scratch_operands = 0 : i64, tpu.core_type = #tpu.core_type<tc>, window_params = [{transform_indices = @transform_0, window_bounds = array<i64: 1, 4, 256>}, {pipeline_mode = #tpu.pipeline_mode<synchronous>, transform_indices = @transform_1, window_bounds = array<i64: 3, 4>}, {pipeline_mode = #tpu.pipeline_mode<synchronous>, transform_indices = @transform_2, window_bounds = array<i64: 3, 1>}, {transform_indices = @transform_3, window_bounds = array<i64: 1, 3, 256>}]} {
    %c0 = arith.constant 0 : index
    %c0_0 = arith.constant 0 : index
    %0 = vector.load %arg3[%c0, %c0_0] : memref<3x4xf32, #tpu.memory_space<vmem>>, vector<3x4xf32>
    %c0_1 = arith.constant 0 : index
    %c0_2 = arith.constant 0 : index
    %1 = vector.load %arg4[%c0_1, %c0_2] : memref<3x1xf32, #tpu.memory_space<vmem>>, vector<3x1xf32>
    %c0_3 = arith.constant 0 : index
    %c0_4 = arith.constant 0 : index
    %c0_5 = arith.constant 0 : index
    %2 = vector.load %arg2[%c0_3, %c0_4, %c0_5] : memref<1x4x256xf32, #tpu.memory_space<vmem>>, vector<1x4x256xf32>
    %3 = vector.shape_cast %2 : vector<1x4x256xf32> to vector<4x256xf32>
    %cst = arith.constant dense<0.000000e+00> : vector<3x256xf32>
    %4 = tpu.matmul %0, %3, %cst {dimension_numbers = #tpu.dot_dimension_numbers<[1], [0], [0], [1], [0, 0, 1, 1], [], []>} : vector<3x4xf32>, vector<4x256xf32>, vector<3x256xf32> -> vector<3x256xf32>
    %5 = vector.broadcast %1 : vector<3x1xf32> to vector<3x256xf32>
    %6 = arith.addf %4, %5 : vector<3x256xf32>
    %c0_6 = arith.constant 0 : index
    %c0_7 = arith.constant 0 : index
    %c0_8 = arith.constant 0 : index
    %7 = vector.load %arg5[%c0_6, %c0_7, %c0_8] : memref<1x3x256xf32, #tpu.memory_space<vmem>>, vector<1x3x256xf32>
    %8 = vector.shape_cast %7 : vector<1x3x256xf32> to vector<3x256xf32>
    %9 = vector.shape_cast %6 : vector<3x256xf32> to vector<1x3x256xf32>
    tpu.vector_store %arg5[%c0_6, %c0_7, %c0_8], %9 {strides = array<i32>} : memref<1x3x256xf32, #tpu.memory_space<vmem>>, vector<1x3x256xf32>,
    return
  }
  func.func @transform_0(%arg0: i32, %arg1: i32) -> (i32, i32, i32) {
    %c0_i32 = arith.constant 0 : i32
    %c0_i32_0 = arith.constant 0 : i32
    return %arg0, %c0_i32, %arg1 : i32, i32, i32
  }
  func.func @transform_1(%arg0: i32, %arg1: i32) -> (i32, i32) {
    %c0_i32 = arith.constant 0 : i32
    %c0_i32_0 = arith.constant 0 : i32
    %c0_i32_1 = arith.constant 0 : i32
    return %c0_i32, %c0_i32_0 : i32, i32
  }
  func.func @transform_2(%arg0: i32, %arg1: i32) -> (i32, i32) {
    %c0_i32 = arith.constant 0 : i32
    %c0_i32_0 = arith.constant 0 : i32
    %c0_i32_1 = arith.constant 0 : i32
    return %c0_i32, %c0_i32_0 : i32, i32
  }
  func.func @transform_3(%arg0: i32, %arg1: i32) -> (i32, i32, i32) {
    %c0_i32 = arith.constant 0 : i32
    %c0_i32_0 = arith.constant 0 : i32
    return %arg0, %c0_i32, %arg1 : i32, i32, i32
  }
}

</mosaic_0001>

<bundles_post_ra>
// kernel: outconv_forward.1
= control target key start
LH: loop header
LB: loop body
LE: loop exit
PB: predicated region body
PF: predicated region fallthrough
CT: control target
= control target key end

     0   :  { %s482_s12 = smov 0   ;;  %s484_s13 = smov 0   ;;  %s521_s0 = inlined_call_operand.vmem [shape: f32[2,4,256], index: 0, kind: input, shape index: {}]   ;;  %s522_s1 = inlined_call_operand.vmem [shape: f32[3,4], index: 1, kind: input, shape index: {}]   ;;  %s523_s2 = inlined_call_operand.vmem [shape: f32[3,1], index: 2, kind: input, shape index: {}]   ;;  %s524_s3 = inlined_call_operand.vmem [shape: f32[2,3,256], index: 3, kind: output, shape index: {}]  }
   0x1   :  { %s486_s14 = smov 0  }
   0x2 LB: > { %s25_s15 = sadd.s32 1, %s454_s13  ;;  %p396_p0 = scmp.ge.s32.totalorder %s458_s14, 1  ;;  %s458_s14 = sphi %s486_s14, %s13_s14   ;;  %s454_s13 = sphi %s484_s13, %s526_s13   ;;  %s450_s12 = sphi %s482_s12, %s525_s12  }
   0x3   : > { %p27_p1 = scmp.ge.s32.totalorder %s25_s15, 2  ;;  %p158_p2 = scmp.lt.s32.totalorder %s458_s14, 3 }
   0x5   : > { %s528_s15 = smov (%p27_p1, %s25_s15), 0  ;;  %p159_p3 = pnand %p396_p0, %p158_p2 }
   0x6   : > { %p191_p4 = scmp.lt.s32.totalorder (!%p159_p3), %s450_s12, 1 }
   0x7   : > { %162 = sbr.rel (%p159_p3) target bundleno = 220 (0xdc), region = 32 }
   0xc   : > { %v460_v0 = vmov 0.0   ;;  %v211_v1 = vld [vmem:[%s523_s2] sm:$0x7]  ;;  %s530_s12 = smov (!%p191_p4, %s450_s12), 1  ;;  %v461_v2 = vmov 0   ;;  %vm224_vm0 = vcmask 1043456  }
   0xd   : > { %293 = vmatprep.mubr.f32.mxu0 %v460_v0  ;;  %434 = vset.pattern.permute.xlu0 %v461_v2  ;;  %s406_s18 = sshll.u32 %s530_s12, 3  ;;  %v210_v5 = vld [vmem:[%s522_s1] sm:$0x7]  ;;  %vm220_vm1 = vcmask 31744  }
   0xe   : > { %215 = vperm.xlu0 %434, %v211_v1   ;;  %s198_s21 = scalar_lea.vmem %s521_s0, %s406_s18  ;;  %s208_s26 = scalar_lea.vmem %s524_s3, %s406_s18 }
   0xf   : > { %v212_v3 = vld [vmem:[%s198_s21] sm:$0xff] }
  0x10   : > { %v219_v4 = vcombine.high %v212_v3, %v212_v3 }
  0x12   : > { %401 = vmatprep.subr.msk.mxu0 %vm224_vm0, %v219_v4 }
  0x13   : > { %402 = vmatpush1.msk.msra.mxu0 %vm224_vm0, %v212_v3 }
  0x14   : > { %403 = vmatmul.mubr.msk.f32.vlgmr.msra.gmra.mxu0 %vm220_vm1, %v210_v5 }
  0x89   : > { %v216_v6 = vpop.permute.xlu0 %215 }
  0xd4   : > { %v295_v7 = vpop.f32.mrf.mxu0 }
  0xd5   : > { %v296_v9 = vadd.f32 %v295_v7, %v216_v6 }
  0xd6   : > { %v297_v8 = vpop.f32.mrf.mxu0 }
  0xd7   : > { %v298_v10 = vadd.f32 %v297_v8, %v216_v6 }
  0xd9   : > { %v302_v11 = vcombine.low %v296_v9, %v298_v10 }
  0xdb   : > { %304 = vst [vmem:[%s208_s26] sm:$0x77] %v302_v11 }
  0xdc PF: > { %s13_s14 = sadd.s32 1, %s458_s14   ;;  %s525_s12 = smov %s454_s13 }
  0xdd   : > { %p10_p5 = scmp.ge.s32.totalorder %s13_s14, 4   ;;  %s526_s13 = smov %s528_s15 }
  0xdf   :  { %12 = sbr.rel (!%p10_p5) target bundleno = 2 (0x2), region = 62 }

</bundles_post_ra>
